<compile_context>
chip_gen: v6e
topology: v6e:2x2x1
jax: 0.10.0
libtpu: 0.0.40
codegen_flags: <defaults>
</compile_context>

<pallas_src>
import math

import jax
import jax.numpy as jnp
from jax.experimental import pallas as pl
from jax.experimental.pallas import tpu as pltpu

LAYER_NORM_EPS = 1e-12


def _number_bert_embeddings_kernel(
    flag_ref,     # (num_tiles,) int32 SMEM (scalar prefetch): 1 iff tile has numeric tokens
    we_ref,       # (TN, H)  bf16   word embeddings (gathered in glue)
    te_ref,       # (1, H) or (TN, H) bf16   token-type embedding(s)
    pe_ref,       # (S, H) resident  or (TN, H) streamed   bf16 position embeddings
    dig_ids_ref,  # (TN, D) int32   digit ids
    mask_ref,     # (TN, 1) f32     number mask column
    xp_tab_ref,   # (n_digit, H) f32  num_emb @ W_ih^T + (b_ih + b_hh), resident
    whh_t_ref,    # (H, H)  bf16    W_hh^T, resident
    gamma_ref,    # (1, H)  f32     LayerNorm weight
    beta_ref,     # (1, H)  f32     LayerNorm bias
    out_ref,      # (TN, H) out dtype
):
    TN, H = out_ref.shape
    i = pl.program_id(0)

    # ---- position embedding block (resident (S,H) sliced in-kernel, or streamed (TN,H)) ----
    if pe_ref.shape[0] == TN:
        pe = pe_ref[...]
    else:
        pe_blocks = pe_ref.shape[0] // TN
        off = pl.multiple_of(jax.lax.rem(i, pe_blocks) * TN, 8)
        pe = pe_ref[pl.ds(off, TN), :]

    # ---- word + token_type + position embeddings, LayerNorm in f32 (dropout = identity) ----
    x = (we_ref[...].astype(jnp.float32)
         + te_ref[...].astype(jnp.float32)
         + pe.astype(jnp.float32))
    mean = jnp.mean(x, axis=-1, keepdims=True)
    xc = x - mean
    var = jnp.mean(xc * xc, axis=-1, keepdims=True)
    ln = xc * jax.lax.rsqrt(var + LAYER_NORM_EPS) * gamma_ref[...] + beta_ref[...]

    has_numbers = flag_ref[i] != 0

    # Exactly one store to out_ref per tile (no read-modify-write of the output block).
    @pl.when(jnp.logical_not(has_numbers))
    def _():
        out_ref[...] = ln.astype(out_ref.dtype)

    @pl.when(has_numbers)
    def _():
        D = dig_ids_ref.shape[1]
        n_digit = xp_tab_ref.shape[0]
        ids = dig_ids_ref[...]                      # (TN, D) int32
        xp_tab = xp_tab_ref[...]                    # (n_digit, H) f32
        whh_t = whh_t_ref[...]                      # (H, H) bf16
        iota = jax.lax.broadcasted_iota(jnp.int32, (TN, n_digit), 1)

        def xproj(t):
            # one-hot gather of the precomputed input projection (exact row pick in f32)
            oh = (ids[:, t:t + 1] == iota).astype(jnp.float32)        # (TN, n_digit)
            return jnp.dot(oh, xp_tab, preferred_element_type=jnp.float32)

        # nn.RNN(tanh, 1 layer), h0 == 0; per-step projection computed where consumed
        # (no D-long list of live (TN, H) values).
        h = jnp.tanh(xproj(0))
        for t in range(1, D):                       # D is small & static -> unrolled
            h = jnp.tanh(
                xproj(t)
                + jnp.dot(h.astype(jnp.bfloat16), whh_t,
                          preferred_element_type=jnp.float32))

        # mask_digit == 0  =>  add masked number embeddings after LayerNorm
        out_ref[...] = (ln + h * mask_ref[...]).astype(out_ref.dtype)


def _largest_tile(n, max_tile):
    """Largest divisor of n that is a multiple of 8 and <= max_tile (None if none)."""
    for t in range(min(n, max_tile), 7, -1):
        if n % t == 0 and t % 8 == 0:
            return t
    return None


def number_bert_embeddings(
    input_ids,          # (B, S) int32
    digits_ids,         # (B, S, D) int32
    number_mask,        # (B, S) float
    params,
    token_type_ids=None,
    position_ids=None,
    past_key_values_length=0,
    mask_digit=0,
    out_dtype=jnp.float32,   # set to jnp.bfloat16 to halve the output writeback
    max_tile=1024,
):
    B, S = input_ids.shape
    N = B * S
    H = params["word_emb"].shape[1]
    D = digits_ids.shape[-1]
    n_digit = params["num_emb"].shape[0]

    # ---- position ids ----
    per_batch_pos = False
    if position_ids is None:
        pos_vec = jnp.arange(S, dtype=jnp.int32) + past_key_values_length     # (S,)
    else:
        pos = jnp.asarray(position_ids, jnp.int32)
        if pos.ndim == 2 and pos.shape[0] > 1:
            per_batch_pos = True                                              # batch-varying
            pos_full = jnp.broadcast_to(pos, (B, S)).reshape(N)
        else:
            pos_vec = pos.reshape(-1)[:S]                                     # shared row

    # ---- token-type embeddings ----
    if token_type_ids is None:
        te_shared = True
        te_arr = params["tok_emb"][0:1].astype(jnp.bfloat16)                  # (1, H) resident
    else:
        te_shared = False
        tt = jnp.broadcast_to(jnp.asarray(token_type_ids, jnp.int32), (B, S)).reshape(N)
        te_arr = params["tok_emb"][tt].astype(jnp.bfloat16)                   # (N, H) streamed

    # ---- token tiling (prefer tiles that divide S so pe can be resident) ----
    tile_s = _largest_tile(S, max_tile)
    if (not per_batch_pos) and tile_s is not None:
        TN, Np, pe_resident = tile_s, N, True
    else:
        pe_resident = False
        TN = _largest_tile(N, max_tile)
        if TN is None:
            Np = ((N + 7) // 8) * 8          # pad token count to a tileable size
            TN = _largest_tile(Np, max_tile)
        else:
            Np = N
    num_tiles = Np // TN
    pad = Np - N

    # ---- position embeddings ----
    if pe_resident:
        pe_arr = params["pos_emb"][pos_vec].astype(jnp.bfloat16)              # (S, H) resident
    else:
        if not per_batch_pos:
            pos_full = jnp.broadcast_to(pos_vec[None, :], (B, S)).reshape(N)
        pe_arr = params["pos_emb"][pos_full].astype(jnp.bfloat16)             # (N, H) streamed

    # ---- per-token streams ----
    we = params["word_emb"][input_ids.reshape(N)].astype(jnp.bfloat16)        # (N, H)
    mask2 = number_mask.astype(jnp.float32).reshape(N, 1)                     # (N, 1)
    dig_ids = digits_ids.reshape(N, D).astype(jnp.int32)                      # (N, D) ids only

    if pad:
        we = jnp.pad(we, ((0, pad), (0, 0)))
        mask2 = jnp.pad(mask2, ((0, pad), (0, 0)))
        dig_ids = jnp.pad(dig_ids, ((0, pad), (0, 0)))
        if not te_shared:
            te_arr = jnp.pad(te_arr, ((0, pad), (0, 0)))
        if not pe_resident:
            pe_arr = jnp.pad(pe_arr, ((0, pad), (0, 0)))

    # ---- resident parameters ----
    xp_tab = (params["num_emb"].astype(jnp.float32)
              @ params["w_ih"].astype(jnp.float32).T
              + (params["b_ih"] + params["b_hh"]).astype(jnp.float32)[None, :])   # (n_digit, H)
    whh_t = params["w_hh"].astype(jnp.bfloat16).T                                 # (H, H)
    gamma = params["ln_gamma"].astype(jnp.float32).reshape(1, H)
    beta = params["ln_beta"].astype(jnp.float32).reshape(1, H)

    # ---- per-tile "any numeric token" flags (skip the RNN on text-only tiles) ----
    if mask_digit != 0:
        # module computes the RNN output but never adds it; skip it entirely
        flags = jnp.zeros((num_tiles,), jnp.int32)
    else:
        flags = (jnp.sum(mask2.reshape(num_tiles, TN), axis=-1) > 0).astype(jnp.int32)

    # ---- VMEM budget (double-buffered streams + residents + live f32 temporaries) ----
    out_itemsize = jnp.dtype(out_dtype).itemsize
    stream_bytes = TN * H * (2 + (0 if te_shared else 2) + (0 if pe_resident else 2) + out_itemsize)
    stream_bytes += TN * (D + 1) * 4
    resident_bytes = ((S * H * 2 if pe_resident else 0) + (H * 2 if te_shared else 0)
                      + H * H * 2 + n_digit * H * 4 + 2 * H * 4)
    live_bytes = 6 * TN * H * 4
    vmem_limit = int(min(48 << 20, max(2 * stream_bytes + 2 * resident_bytes + live_bytes,
                                       16 << 20)))

    grid_spec = pltpu.PrefetchScalarGridSpec(
        num_scalar_prefetch=1,
        grid=(num_tiles,),
        in_specs=[
            pl.BlockSpec((TN, H), lambda i, flag: (i, 0)),                     # word emb
            (pl.BlockSpec((1, H), lambda i, flag: (0, 0)) if te_shared
             else pl.BlockSpec((TN, H), lambda i, flag: (i, 0))),              # token-type emb
            (pl.BlockSpec((S, H), lambda i, flag: (0, 0)) if pe_resident
             else pl.BlockSpec((TN, H), lambda i, flag: (i, 0))),              # position emb
            pl.BlockSpec((TN, D), lambda i, flag: (i, 0)),                     # digit ids
            pl.BlockSpec((TN, 1), lambda i, flag: (i, 0)),                     # number mask
            pl.BlockSpec((n_digit, H), lambda i, flag: (0, 0)),                # xp table (resident)
            pl.BlockSpec((H, H), lambda i, flag: (0, 0)),                      # W_hh^T (resident)
            pl.BlockSpec((1, H), lambda i, flag: (0, 0)),                      # LN gamma
            pl.BlockSpec((1, H), lambda i, flag: (0, 0)),                      # LN beta
        ],
        out_specs=pl.BlockSpec((TN, H), lambda i, flag: (i, 0)),
    )

    out = pl.pallas_call(
        _number_bert_embeddings_kernel,
        out_shape=jax.ShapeDtypeStruct((Np, H), out_dtype),
        grid_spec=grid_spec,
        compiler_params=pltpu.CompilerParams(
            dimension_semantics=("parallel",),        # token tiles independent (megacore on v7x)
            vmem_limit_bytes=vmem_limit,
        ),
    )(flags, we, te_arr, pe_arr, dig_ids, mask2, xp_tab, whh_t, gamma, beta)

    return out[:N].reshape(B, S, H)


def _reference(input_ids, digits_ids, number_mask, params,
               token_type_ids=None, position_ids=None, past_key_values_length=0):
    """Plain-JAX f32 reference matching the PyTorch module (mask_digit == 0, eval)."""
    B, S = input_ids.shape
    H = params["word_emb"].shape[1]
    if position_ids is None:
        pos = jnp.arange(S, dtype=jnp.int32) + past_key_values_length
        pos = jnp.broadcast_to(pos[None, :], (B, S))
    else:
        pos = jnp.broadcast_to(jnp.asarray(position_ids, jnp.int32), (B, S))
    if token_type_ids is None:
        token_type_ids = jnp.zeros((B, S), jnp.int32)

    x = (params["word_emb"][input_ids]
         + params["tok_emb"][token_type_ids]
         + params["pos_emb"][pos]).astype(jnp.float32)
    mean = x.mean(-1, keepdims=True)
    var = ((x - mean) ** 2).mean(-1, keepdims=True)
    ln = (x - mean) * jax.lax.rsqrt(var + LAYER_NORM_EPS) * params["ln_gamma"] + params["ln_beta"]

    dig = params["num_emb"][digits_ids.reshape(B * S, -1)].astype(jnp.float32)   # (N, D, E)
    h = jnp.zeros((B * S, H), jnp.float32)
    for t in range(dig.shape[1]):
        h = jnp.tanh(dig[:, t] @ params["w_ih"].T + params["b_ih"]
                     + h @ params["w_hh"].T + params["b_hh"])
    h = h.reshape(B, S, H) * number_mask.astype(jnp.float32)[..., None]
    return ln + h


def make_params(key, vocab_size, hidden, max_pos, type_vocab, n_digit, es_digit,
                pad_token_id=0):
    ks = jax.random.split(key, 8)
    k = 1.0 / math.sqrt(hidden)
    word_emb = 0.02 * jax.random.normal(ks[0], (vocab_size, hidden), jnp.float32)
    word_emb = word_emb.at[pad_token_id].set(0.0)   # padding_idx row zeroed
    return {
        "word_emb": word_emb,
        "pos_emb": 0.02 * jax.random.normal(ks[1], (max_pos, hidden), jnp.float32),
        "tok_emb": 0.02 * jax.random.normal(ks[2], (type_vocab, hidden), jnp.float32),
        "num_emb": 0.02 * jax.random.normal(ks[3], (n_digit, es_digit), jnp.float32),
        "w_ih": jax.random.uniform(ks[4], (hidden, es_digit), jnp.float32, -k, k),
        "w_hh": jax.random.uniform(ks[5], (hidden, hidden), jnp.float32, -k, k),
        "b_ih": jax.random.uniform(ks[6], (hidden,), jnp.float32, -k, k),
        "b_hh": jax.random.uniform(ks[7], (hidden,), jnp.float32, -k, k),
        "ln_gamma": jnp.ones((hidden,), jnp.float32),
        "ln_beta": jnp.zeros((hidden,), jnp.float32),
    }


if __name__ == "__main__":
    # small config consistent with the module
    B, S, H = 2, 8, 32
    VOCAB, MAX_POS, TYPE_VOCAB = 100, 64, 2
    N_DIGIT, ES_DIGIT, D_DIGITS = 10, 16, 6
    PAD_ID = 0

    root = jax.random.PRNGKey(0)
    kp, k_ids, k_dig, k_mask = jax.random.split(root, 4)

    params = make_params(kp, VOCAB, H, MAX_POS, TYPE_VOCAB, N_DIGIT, ES_DIGIT,
                         pad_token_id=PAD_ID)

    input_ids = jax.random.randint(k_ids, (B, S), 0, VOCAB, dtype=jnp.int32)
    digits_ids = jax.random.randint(k_dig, (B, S, D_DIGITS), 0, N_DIGIT, dtype=jnp.int32)
    number_mask = (jax.random.uniform(k_mask, (B, S)) > 0.5).astype(jnp.float32)

    out = number_bert_embeddings(input_ids, digits_ids, number_mask, params)
    out = jax.block_until_ready(out)
    assert out.shape == (B, S, H) and out.dtype == jnp.float32

    ref = _reference(input_ids, digits_ids, number_mask, params)
    err = float(jnp.max(jnp.abs(out - ref.astype(jnp.float32))))
    assert err < 1e-1, f"max abs error vs reference too large: {err}"
    print("KERNEL_OK")
</pallas_src>

<mosaic_0001>
module attributes {stable_mosaic.version = 11 : i64} {
  func.func @_number_bert_embeddings_kernel(%arg0: i32, %arg1: memref<2xi32, #tpu.memory_space<smem>>, %arg2: memref<8x32xbf16, #tpu.memory_space<vmem>>, %arg3: memref<1x32xbf16, #tpu.memory_space<vmem>>, %arg4: memref<8x32xbf16, #tpu.memory_space<vmem>>, %arg5: memref<8x6xi32, #tpu.memory_space<vmem>>, %arg6: memref<8x1xf32, #tpu.memory_space<vmem>>, %arg7: memref<10x32xf32, #tpu.memory_space<vmem>>, %arg8: memref<32x32xbf16, #tpu.memory_space<vmem>>, %arg9: memref<1x32xf32, #tpu.memory_space<vmem>>, %arg10: memref<1x32xf32, #tpu.memory_space<vmem>>, %arg11: memref<8x32xf32, #tpu.memory_space<vmem>>) attributes {dimension_semantics = [#tpu.dimension_semantics<parallel>], iteration_bounds = array<i64: 2>, scalar_prefetch = 1 : i64, scratch_operands = 0 : i64, tpu.core_type = #tpu.core_type<tc>, window_params = [{transform_indices = @transform_0, window_bounds = array<i64: 8, 32>}, {pipeline_mode = #tpu.pipeline_mode<synchronous>, transform_indices = @transform_1, window_bounds = array<i64: 1, 32>}, {pipeline_mode = #tpu.pipeline_mode<synchronous>, transform_indices = @transform_2, window_bounds = array<i64: 8, 32>}, {transform_indices = @transform_3, window_bounds = array<i64: 8, 6>}, {transform_indices = @transform_4, window_bounds = array<i64: 8, 1>}, {pipeline_mode = #tpu.pipeline_mode<synchronous>, transform_indices = @transform_5, window_bounds = array<i64: 10, 32>}, {pipeline_mode = #tpu.pipeline_mode<synchronous>, transform_indices = @transform_6, window_bounds = array<i64: 32, 32>}, {pipeline_mode = #tpu.pipeline_mode<synchronous>, transform_indices = @transform_7, window_bounds = array<i64: 1, 32>}, {pipeline_mode = #tpu.pipeline_mode<synchronous>, transform_indices = @transform_8, window_bounds = array<i64: 1, 32>}, {transform_indices = @transform_9, window_bounds = array<i64: 8, 32>}]} {
    %c0 = arith.constant 0 : index
    %c0_0 = arith.constant 0 : index
    %0 = vector.load %arg4[%c0, %c0_0] : memref<8x32xbf16, #tpu.memory_space<vmem>>, vector<8x32xbf16>
    %c0_1 = arith.constant 0 : index
    %c0_2 = arith.constant 0 : index
    %1 = vector.load %arg2[%c0_1, %c0_2] : memref<8x32xbf16, #tpu.memory_space<vmem>>, vector<8x32xbf16>
    %2 = arith.extf %1 : vector<8x32xbf16> to vector<8x32xf32>
    %c0_3 = arith.constant 0 : index
    %c0_4 = arith.constant 0 : index
    %3 = vector.load %arg3[%c0_3, %c0_4] : memref<1x32xbf16, #tpu.memory_space<vmem>>, vector<1x32xbf16>
    %4 = arith.extf %3 : vector<1x32xbf16> to vector<1x32xf32>
    %5 = vector.broadcast %4 : vector<1x32xf32> to vector<8x32xf32>
    %6 = arith.addf %2, %5 : vector<8x32xf32>
    %7 = arith.extf %0 : vector<8x32xbf16> to vector<8x32xf32>
    %8 = arith.addf %6, %7 : vector<8x32xf32>
    %cst = arith.constant dense<0.000000e+00> : vector<8xf32>
    %9 = vector.multi_reduction <add>, %8, %cst [1] : vector<8x32xf32> to vector<8xf32>
    %10 = vector.shape_cast %9 : vector<8xf32> to vector<8x1xf32>
    %cst_5 = arith.constant 3.200000e+01 : f32
    %11 = vector.broadcast %cst_5 : f32 to vector<8x1xf32>
    %12 = arith.divf %10, %11 : vector<8x1xf32>
    %13 = vector.broadcast %12 : vector<8x1xf32> to vector<8x32xf32>
    %14 = arith.subf %8, %13 : vector<8x32xf32>
    %15 = arith.mulf %14, %14 : vector<8x32xf32>
    %cst_6 = arith.constant dense<0.000000e+00> : vector<8xf32>
    %16 = vector.multi_reduction <add>, %15, %cst_6 [1] : vector<8x32xf32> to vector<8xf32>
    %17 = vector.shape_cast %16 : vector<8xf32> to vector<8x1xf32>
    %cst_7 = arith.constant 3.200000e+01 : f32
    %18 = vector.broadcast %cst_7 : f32 to vector<8x1xf32>
    %19 = arith.divf %17, %18 : vector<8x1xf32>
    %cst_8 = arith.constant 9.99999996E-13 : f32
    %20 = vector.broadcast %cst_8 : f32 to vector<8x1xf32>
    %21 = arith.addf %19, %20 : vector<8x1xf32>
    %22 = math.rsqrt %21 : vector<8x1xf32>
    %23 = vector.broadcast %22 : vector<8x1xf32> to vector<8x32xf32>
    %24 = arith.mulf %14, %23 : vector<8x32xf32>
    %c0_9 = arith.constant 0 : index
    %c0_10 = arith.constant 0 : index
    %25 = vector.load %arg9[%c0_9, %c0_10] : memref<1x32xf32, #tpu.memory_space<vmem>>, vector<1x32xf32>
    %26 = vector.broadcast %25 : vector<1x32xf32> to vector<8x32xf32>
    %27 = arith.mulf %24, %26 : vector<8x32xf32>
    %c0_11 = arith.constant 0 : index
    %c0_12 = arith.constant 0 : index
    %28 = vector.load %arg10[%c0_11, %c0_12] : memref<1x32xf32, #tpu.memory_space<vmem>>, vector<1x32xf32>
    %29 = vector.broadcast %28 : vector<1x32xf32> to vector<8x32xf32>
    %30 = arith.addf %27, %29 : vector<8x32xf32>
    %31 = arith.index_cast %arg0 : i32 to index
    %32 = memref.load %arg1[%31] : memref<2xi32, #tpu.memory_space<smem>>
    %c0_i32 = arith.constant 0 : i32
    %33 = arith.cmpi ne, %32, %c0_i32 : i32
    %true = arith.constant true
    %34 = arith.xori %33, %true : i1
    %35 = arith.extui %34 : i1 to i32
    %c0_i32_13 = arith.constant 0 : i32
    %36 = arith.cmpi ne, %35, %c0_i32_13 : i32
    scf.if %36 {
      %c0_15 = arith.constant 0 : index
      %c0_16 = arith.constant 0 : index
      %39 = vector.load %arg11[%c0_15, %c0_16] : memref<8x32xf32, #tpu.memory_space<vmem>>, vector<8x32xf32>
      tpu.vector_store %arg11[%c0_15, %c0_16], %30 {strides = array<i32>} : memref<8x32xf32, #tpu.memory_space<vmem>>, vector<8x32xf32>,
    } else {
    }
    %37 = arith.extui %33 : i1 to i32
    %c0_i32_14 = arith.constant 0 : i32
    %38 = arith.cmpi ne, %37, %c0_i32_14 : i32
    scf.if %38 {
      %c0_15 = arith.constant 0 : index
      %c0_16 = arith.constant 0 : index
      %39 = vector.load %arg5[%c0_15, %c0_16] : memref<8x6xi32, #tpu.memory_space<vmem>>, vector<8x6xi32>
      %c0_17 = arith.constant 0 : index
      %c0_18 = arith.constant 0 : index
      %40 = vector.load %arg7[%c0_17, %c0_18] : memref<10x32xf32, #tpu.memory_space<vmem>>, vector<10x32xf32>
      %c0_19 = arith.constant 0 : index
      %c0_20 = arith.constant 0 : index
      %41 = vector.load %arg8[%c0_19, %c0_20] : memref<32x32xbf16, #tpu.memory_space<vmem>>, vector<32x32xbf16>
      %42 = tpu.iota {dimensions = array<i32: 1>} : vector<8x10xi32>
      %43 = vector.extract_strided_slice %39 {offsets = [0, 0], sizes = [8, 1], strides = [1, 1]} : vector<8x6xi32> to vector<8x1xi32>
      %44 = vector.broadcast %43 : vector<8x1xi32> to vector<8x10xi32>
      %45 = arith.cmpi eq, %44, %42 : vector<8x10xi32>
      %46 = arith.extui %45 : vector<8x10xi1> to vector<8x10xi32>
      %47 = arith.sitofp %46 : vector<8x10xi32> to vector<8x10xf32>
      %cst_21 = arith.constant dense<0.000000e+00> : vector<8x32xf32>
      %48 = tpu.matmul %47, %40, %cst_21 {dimension_numbers = #tpu.dot_dimension_numbers<[1], [0], [0], [1], [0, 0, 1, 1], [], []>} : vector<8x10xf32>, vector<10x32xf32>, vector<8x32xf32> -> vector<8x32xf32>
      %49 = math.tanh %48 : vector<8x32xf32>
      %50 = vector.extract_strided_slice %39 {offsets = [0, 1], sizes = [8, 1], strides = [1, 1]} : vector<8x6xi32> to vector<8x1xi32>
      %51 = vector.broadcast %50 : vector<8x1xi32> to vector<8x10xi32>
      %52 = arith.cmpi eq, %51, %42 : vector<8x10xi32>
      %53 = arith.extui %52 : vector<8x10xi1> to vector<8x10xi32>
      %54 = arith.sitofp %53 : vector<8x10xi32> to vector<8x10xf32>
      %cst_22 = arith.constant dense<0.000000e+00> : vector<8x32xf32>
      %55 = tpu.matmul %54, %40, %cst_22 {dimension_numbers = #tpu.dot_dimension_numbers<[1], [0], [0], [1], [0, 0, 1, 1], [], []>} : vector<8x10xf32>, vector<10x32xf32>, vector<8x32xf32> -> vector<8x32xf32>
      %56 = arith.truncf %49 : vector<8x32xf32> to vector<8x32xbf16>
      %cst_23 = arith.constant dense<0.000000e+00> : vector<8x32xf32>
      %57 = tpu.matmul %56, %41, %cst_23 {dimension_numbers = #tpu.dot_dimension_numbers<[1], [0], [0], [1], [0, 0, 1, 1], [], []>} : vector<8x32xbf16>, vector<32x32xbf16>, vector<8x32xf32> -> vector<8x32xf32>
      %58 = arith.addf %55, %57 : vector<8x32xf32>
      %59 = math.tanh %58 : vector<8x32xf32>
      %60 = vector.extract_strided_slice %39 {offsets = [0, 2], sizes = [8, 1], strides = [1, 1]} : vector<8x6xi32> to vector<8x1xi32>
      %61 = vector.broadcast %60 : vector<8x1xi32> to vector<8x10xi32>
      %62 = arith.cmpi eq, %61, %42 : vector<8x10xi32>
      %63 = arith.extui %62 : vector<8x10xi1> to vector<8x10xi32>
      %64 = arith.sitofp %63 : vector<8x10xi32> to vector<8x10xf32>
      %cst_24 = arith.constant dense<0.000000e+00> : vector<8x32xf32>
      %65 = tpu.matmul %64, %40, %cst_24 {dimension_numbers = #tpu.dot_dimension_numbers<[1], [0], [0], [1], [0, 0, 1, 1], [], []>} : vector<8x10xf32>, vector<10x32xf32>, vector<8x32xf32> -> vector<8x32xf32>
      %66 = arith.truncf %59 : vector<8x32xf32> to vector<8x32xbf16>
      %cst_25 = arith.constant dense<0.000000e+00> : vector<8x32xf32>
      %67 = tpu.matmul %66, %41, %cst_25 {dimension_numbers = #tpu.dot_dimension_numbers<[1], [0], [0], [1], [0, 0, 1, 1], [], []>} : vector<8x32xbf16>, vector<32x32xbf16>, vector<8x32xf32> -> vector<8x32xf32>
      %68 = arith.addf %65, %67 : vector<8x32xf32>
      %69 = math.tanh %68 : vector<8x32xf32>
      %70 = vector.extract_strided_slice %39 {offsets = [0, 3], sizes = [8, 1], strides = [1, 1]} : vector<8x6xi32> to vector<8x1xi32>
      %71 = vector.broadcast %70 : vector<8x1xi32> to vector<8x10xi32>
      %72 = arith.cmpi eq, %71, %42 : vector<8x10xi32>
      %73 = arith.extui %72 : vector<8x10xi1> to vector<8x10xi32>
      %74 = arith.sitofp %73 : vector<8x10xi32> to vector<8x10xf32>
      %cst_26 = arith.constant dense<0.000000e+00> : vector<8x32xf32>
      %75 = tpu.matmul %74, %40, %cst_26 {dimension_numbers = #tpu.dot_dimension_numbers<[1], [0], [0], [1], [0, 0, 1, 1], [], []>} : vector<8x10xf32>, vector<10x32xf32>, vector<8x32xf32> -> vector<8x32xf32>
      %76 = arith.truncf %69 : vector<8x32xf32> to vector<8x32xbf16>
      %cst_27 = arith.constant dense<0.000000e+00> : vector<8x32xf32>
      %77 = tpu.matmul %76, %41, %cst_27 {dimension_numbers = #tpu.dot_dimension_numbers<[1], [0], [0], [1], [0, 0, 1, 1], [], []>} : vector<8x32xbf16>, vector<32x32xbf16>, vector<8x32xf32> -> vector<8x32xf32>
      %78 = arith.addf %75, %77 : vector<8x32xf32>
      %79 = math.tanh %78 : vector<8x32xf32>
      %80 = vector.extract_strided_slice %39 {offsets = [0, 4], sizes = [8, 1], strides = [1, 1]} : vector<8x6xi32> to vector<8x1xi32>
      %81 = vector.broadcast %80 : vector<8x1xi32> to vector<8x10xi32>
      %82 = arith.cmpi eq, %81, %42 : vector<8x10xi32>
      %83 = arith.extui %82 : vector<8x10xi1> to vector<8x10xi32>
      %84 = arith.sitofp %83 : vector<8x10xi32> to vector<8x10xf32>
      %cst_28 = arith.constant dense<0.000000e+00> : vector<8x32xf32>
      %85 = tpu.matmul %84, %40, %cst_28 {dimension_numbers = #tpu.dot_dimension_numbers<[1], [0], [0], [1], [0, 0, 1, 1], [], []>} : vector<8x10xf32>, vector<10x32xf32>, vector<8x32xf32> -> vector<8x32xf32>
      %86 = arith.truncf %79 : vector<8x32xf32> to vector<8x32xbf16>
      %cst_29 = arith.constant dense<0.000000e+00> : vector<8x32xf32>
      %87 = tpu.matmul %86, %41, %cst_29 {dimension_numbers = #tpu.dot_dimension_numbers<[1], [0], [0], [1], [0, 0, 1, 1], [], []>} : vector<8x32xbf16>, vector<32x32xbf16>, vector<8x32xf32> -> vector<8x32xf32>
      %88 = arith.addf %85, %87 : vector<8x32xf32>
      %89 = math.tanh %88 : vector<8x32xf32>
      %90 = vector.extract_strided_slice %39 {offsets = [0, 5], sizes = [8, 1], strides = [1, 1]} : vector<8x6xi32> to vector<8x1xi32>
      %91 = vector.broadcast %90 : vector<8x1xi32> to vector<8x10xi32>
      %92 = arith.cmpi eq, %91, %42 : vector<8x10xi32>
      %93 = arith.extui %92 : vector<8x10xi1> to vector<8x10xi32>
      %94 = arith.sitofp %93 : vector<8x10xi32> to vector<8x10xf32>
      %cst_30 = arith.constant dense<0.000000e+00> : vector<8x32xf32>
      %95 = tpu.matmul %94, %40, %cst_30 {dimension_numbers = #tpu.dot_dimension_numbers<[1], [0], [0], [1], [0, 0, 1, 1], [], []>} : vector<8x10xf32>, vector<10x32xf32>, vector<8x32xf32> -> vector<8x32xf32>
      %96 = arith.truncf %89 : vector<8x32xf32> to vector<8x32xbf16>
      %cst_31 = arith.constant dense<0.000000e+00> : vector<8x32xf32>
      %97 = tpu.matmul %96, %41, %cst_31 {dimension_numbers = #tpu.dot_dimension_numbers<[1], [0], [0], [1], [0, 0, 1, 1], [], []>} : vector<8x32xbf16>, vector<32x32xbf16>, vector<8x32xf32> -> vector<8x32xf32>
      %98 = arith.addf %95, %97 : vector<8x32xf32>
      %99 = math.tanh %98 : vector<8x32xf32>
      %c0_32 = arith.constant 0 : index
      %c0_33 = arith.constant 0 : index
      %100 = vector.load %arg6[%c0_32, %c0_33] : memref<8x1xf32, #tpu.memory_space<vmem>>, vector<8x1xf32>
      %101 = vector.broadcast %100 : vector<8x1xf32> to vector<8x32xf32>
      %102 = arith.mulf %99, %101 : vector<8x32xf32>
      %103 = arith.addf %30, %102 : vector<8x32xf32>
      %c0_34 = arith.constant 0 : index
      %c0_35 = arith.constant 0 : index
      %104 = vector.load %arg11[%c0_34, %c0_35] : memref<8x32xf32, #tpu.memory_space<vmem>>, vector<8x32xf32>
      tpu.vector_store %arg11[%c0_34, %c0_35], %103 {strides = array<i32>} : memref<8x32xf32, #tpu.memory_space<vmem>>, vector<8x32xf32>,
    } else {
    }
    return
  }
  func.func @transform_0(%arg0: i32, %arg1: memref<2xi32, #tpu.memory_space<smem>>) -> (i32, i32) {
    %c0_i32 = arith.constant 0 : i32
    %c0_i32_0 = arith.constant 0 : i32
    return %arg0, %c0_i32 : i32, i32
  }
  func.func @transform_1(%arg0: i32, %arg1: memref<2xi32, #tpu.memory_space<smem>>) -> (i32, i32) {
    %c0_i32 = arith.constant 0 : i32
    %c0_i32_0 = arith.constant 0 : i32
    %c0_i32_1 = arith.constant 0 : i32
    return %c0_i32, %c0_i32_0 : i32, i32
  }
  func.func @transform_2(%arg0: i32, %arg1: memref<2xi32, #tpu.memory_space<smem>>) -> (i32, i32) {
    %c0_i32 = arith.constant 0 : i32
    %c0_i32_0 = arith.constant 0 : i32
    %c0_i32_1 = arith.constant 0 : i32
    return %c0_i32, %c0_i32_0 : i32, i32
  }
  func.func @transform_3(%arg0: i32, %arg1: memref<2xi32, #tpu.memory_space<smem>>) -> (i32, i32) {
    %c0_i32 = arith.constant 0 : i32
    %c0_i32_0 = arith.constant 0 : i32
    return %arg0, %c0_i32 : i32, i32
  }
  func.func @transform_4(%arg0: i32, %arg1: memref<2xi32, #tpu.memory_space<smem>>) -> (i32, i32) {
    %c0_i32 = arith.constant 0 : i32
    %c0_i32_0 = arith.constant 0 : i32
    return %arg0, %c0_i32 : i32, i32
  }
  func.func @transform_5(%arg0: i32, %arg1: memref<2xi32, #tpu.memory_space<smem>>) -> (i32, i32) {
    %c0_i32 = arith.constant 0 : i32
    %c0_i32_0 = arith.constant 0 : i32
    %c0_i32_1 = arith.constant 0 : i32
    return %c0_i32, %c0_i32_0 : i32, i32
  }
  func.func @transform_6(%arg0: i32, %arg1: memref<2xi32, #tpu.memory_space<smem>>) -> (i32, i32) {
    %c0_i32 = arith.constant 0 : i32
    %c0_i32_0 = arith.constant 0 : i32
    %c0_i32_1 = arith.constant 0 : i32
    return %c0_i32, %c0_i32_0 : i32, i32
  }
  func.func @transform_7(%arg0: i32, %arg1: memref<2xi32, #tpu.memory_space<smem>>) -> (i32, i32) {
    %c0_i32 = arith.constant 0 : i32
    %c0_i32_0 = arith.constant 0 : i32
    %c0_i32_1 = arith.constant 0 : i32
    return %c0_i32, %c0_i32_0 : i32, i32
  }
  func.func @transform_8(%arg0: i32, %arg1: memref<2xi32, #tpu.memory_space<smem>>) -> (i32, i32) {
    %c0_i32 = arith.constant 0 : i32
    %c0_i32_0 = arith.constant 0 : i32
    %c0_i32_1 = arith.constant 0 : i32
    return %c0_i32, %c0_i32_0 : i32, i32
  }
  func.func @transform_9(%arg0: i32, %arg1: memref<2xi32, #tpu.memory_space<smem>>) -> (i32, i32) {
    %c0_i32 = arith.constant 0 : i32
    %c0_i32_0 = arith.constant 0 : i32
    return %arg0, %c0_i32 : i32, i32
  }
}

</mosaic_0001>

<bundles_post_ra>
// kernel: tpu_custom_call.1
= control target key start
LH: loop header
LB: loop body
LE: loop exit
PB: predicated region body
PF: predicated region fallthrough
CT: control target
= control target key end

     0   :  { %s1621_s13 = smov [#allocation3]   ;;  %s1968_s0 = inlined_call_operand.hbm [shape: s32[2], index: 0, kind: input, shape index: {}]   ;;  %s1969_s1 = inlined_call_operand.vmem [shape: bf16[16,32], index: 1, kind: input, shape index: {}]   ;;  %s1970_s2 = inlined_call_operand.hbm [shape: bf16[1,32], index: 2, kind: input, shape index: {}]   ;;  %s1971_s3 = inlined_call_operand.vmem [shape: bf16[8,32], index: 3, kind: input, shape index: {}]   ;;  %s1972_s4 = inlined_call_operand.vmem [shape: s32[16,6], index: 4, kind: input, shape index: {}]   ;;  %s1973_s5 = inlined_call_operand.vmem [shape: f32[16,1], index: 5, kind: input, shape index: {}]   ;;  %s1974_s6 = inlined_call_operand.vmem [shape: f32[10,32], index: 6, kind: input, shape index: {}]   ;;  %s1975_s7 = inlined_call_operand.vmem [shape: bf16[32,32], index: 7, kind: input, shape index: {}]   ;;  %s1976_s8 = inlined_call_operand.vmem [shape: f32[1,32], index: 8, kind: input, shape index: {}]   ;;  %s1977_s9 = inlined_call_operand.vmem [shape: f32[1,32], index: 9, kind: input, shape index: {}]   ;;  %s1978_s10 = inlined_call_operand.hbm [shape: f32[16,32], index: 10, kind: output, shape index: {}]  }
   0x1   :  { %1980 = sst [smem:[#allocation13_spill]] %s1970_s2 }
   0x2   :  { %16 = dma.hbm_to_smem %s1968_s0, 16, %s1621_s13, [#allocation2] }
   0x3   :  { %1595 = dma.done.wait [#allocation2], 16 }
   0x4   :  { %1596 = vsyncadd [#allocation2], 4294967280 }
   0x5   :  { %18 = sfence }
   0x6   :  { %19 = vsyncpa [#allocation5], 0 }
   0x7   :  { %20 = vsyncpa [#allocation6], 0 }
   0x8   :  { %22 = vsyncpa [#allocation6 + $0x1], 0  ;;  %s1690_s16 = smov 0   ;;  %s1692_s17 = smov 0  }
   0x9   :  { %s1694_s18 = smov 0   ;;  %s1696_s19 = smov 0  }
   0xa LB: > { %1981 = sst [smem:[#allocation11_spill]] %s1615_s18  ;;  %s1711_s0 = sadd.s32 4294967295, %s1619_s19   ;;  %s1619_s19 = sphi %s1696_s19, %s1991_s19   ;;  %s1615_s18 = sphi %s1694_s18, %s1988_s18   ;;  %s1611_s17 = sphi %s1692_s17, %s1990_s17   ;;  %s1607_s16 = sphi %s1690_s16, %s1989_s16  }
   0xb   : > { %s1278_s20 = sadd.s32 4294967294, %s1619_s19   ;;  %s1715_s21 = sadd.s32 1, %s1619_s19  }
   0xc   : > { %s239_s22 = sadd.s32 1, %s1615_s18  ;;  %s236_s23 = ssub.s32 %s1619_s19, %s1715_s21 }
   0xd   : > { %p249_p0 = scmp.ne.s32.totalorder %s1615_s18, %s1611_s17  ;;  %p237_p1 = scmp.eq.s32.totalorder %s236_s23, 0 }
   0xe   : > { %p250_p2 = scmp.eq.s32.totalorder %s1711_s0, 1  ;;  %p255_p3 = scmp.ne.s32.totalorder %s1611_s17, %s1607_s16 }
   0xf   : > { %p256_p4 = scmp.eq.s32.totalorder %s1278_s20, 1  ;;  %p1279_p7 = scmp.ge.s32.totalorder %s1619_s19, 1 }
  0x10   : > { %s1726_s24 = scalar_select %p237_p1, %s1615_s18, %s239_s22  }
  0x11   : > { %p1728_p5 = por %p250_p2, %p249_p0  ;;  %p1732_p6 = por %p256_p4, %p255_p3 }
  0x12   : > { %1982 = sst [smem:[#allocation12_spill]] %s1726_s24  ;;  %p263_p8 = scmp.lt.s32.totalorder %s1619_s19, 3 }
  0x13   : > { %p1450_p9 = scmp.eq.s32.totalorder %s1711_s0, 0  ;;  %s1622_s28 = smov [#allocation4]  }
  0x14   : > { %p1739_p10 = pnand %p1279_p7, %p263_p8  ;;  %s276_s29 = sshll.u32 %s1622_s28, 4  ;;  %s277_s29 = int_to_ptr.vmem [resolvable:$true] %s276_s29 }
  0x15   : > { %s1538_s30 = scalar_lea.vmem %s277_s29, 16  ;;  %s1545_s11 = scalar_lea.vmem %s277_s29, 32 }
  0x16   : > { %p1442_p11 = pneg %p1739_p10  ;;  %p1539_p0 = scmp.ne.s32.totalorder %s277_s29, %s1538_s30 }
  0x17   : > { %p1546_p3 = scmp.lt.s32.totalorder %s277_s29, %s277_s29  ;;  %p1547_p4 = scmp.lt.s32.totalorder %s1545_s11, %s1538_s30 }
  0x18   : > { %p1443_p12 = pnand %p1450_p9, %p1442_p11 }
  0x19   : > { %p1548_p7 = por %p1547_p4, %p1546_p3 }
  0x1a   : > { %p1529_p13 = pneg %p1443_p12 }
  0x1c   : > { %p1541_p1 = pnand %p1539_p0, %p1529_p13 }
  0x1e   : > { %p1542_p2 = pneg %p1541_p1 }
  0x20   : > { %p1549_p8 = pnand %p1548_p7, %p1542_p2 }
  0x22   : > { %1552 = shalt.err (!%p1549_p8)
}
  0x23   : > { %s1986_s2 = sld [smem:[#allocation13_spill]] }
  0x25   : > { %325 = sbr.rel (%p1739_p10) target bundleno = 1790 (0x6fe), region = 56 }
  0x29   : > { %1445 = dma.hbm_to_vmem [thread:$0]  (!%p1443_p12), %s1986_s2, 16, %s277_s29, [#allocation5]  }
  0x2a   : > { %1598 = dma.done.wait (%p1450_p9), [#allocation5], 16  }
  0x2b   : > { %1600 = vsyncadd (%p1450_p9), [#allocation5], 4294967280  ;;  %p368_p11 = scmp.lt.s32.totalorder %s1711_s0, 1  ;;  %v386_v0 = vlaneseq  ;;  %s1758_s14 = sld [smem:[#allocation3 + %s1711_s0]]  ;;  %v381_v3 = vld [vmem:[%s1971_s3] sm:$0xf] }
  0x2c   : > { %v384_v5 = vld [vmem:[#allocation4] sm:$0x1]  ;;  %v391_v9 = vunpack.c.l.bf16 %v381_v3  ;;  %vm393_vm0 = vcmask 261120   ;;  %s365_s18 = sand.u32 1, %s1611_s17  }
  0x2d   : > { %s369_s15 = scalar_select %p368_p11, %s1711_s0, 1  ;;  %v387_v1 = vshrl.u32 %v386_v0, 7  ;;  %v385_v7 = vunpack.c.l.bf16 %v384_v5  ;;  %v1288_v22 = vld [vmem:[%s1976_s8] ss:$0 sm:$0xff] }
  0x2e   : > { %s1284_s24 = sshll.u32 %s365_s18, 3  ;;  %v1289_v24 = vld [vmem:[%s1977_s9] ss:$0 sm:$0xff] }
  0x2f   : > { %s1285_s20 = sshll.u32 %s369_s15, 2  ;;  %s1286_s22 = sshll.u32 %s369_s15, 3  ;;  %v388_v2 = vsub.s32 0, %v387_v1 }
  0x30   : > { %s371_s28 = scalar_lea.vmem %s1969_s1, %s1285_s20  ;;  %s1768_s11 = scalar_lea.vmem %s1972_s4, %s1286_s22 }
  0x31   : > { %s1773_s2 = scalar_lea.vmem %s1973_s5, %s1286_s22  ;;  %v382_v4 = vld [vmem:[%s371_s28] sm:$0xf]  ;;  %v389_v8 = vrot.slane %v385_v7, %v388_v2  ;;  %s1791_s27 = scalar_lea.vmem [#allocation7], %s1284_s24 }
  0x32   : > { %v383_v6 = vunpack.c.l.bf16 %v382_v4  ;;  %p1290_p9 = scmp.ne.s32.totalorder %s1758_s14, 0 }
  0x34   : > { %v390_v10 = vadd.f32 %v389_v8, %v383_v6 }
  0x36   : > { %v392_v11 = vadd.f32 %v391_v9, %v390_v10 }
  0x38   : > { %v394_v12 = vsel %vm393_vm0, %v392_v11, 0.0 }
  0x39   : > { %395 = vadd.xlane.f32.xlu0 %v394_v12 }
  0xc2   : > { %v396_v13 = vpop.xlane.xlu0 %395 }
  0xc3   : > { %v398_v14 = vmul.f32 0.03125, %v396_v13 }
  0xc5   : > { %v399_v15 = vsub.f32 %v392_v11, %v398_v14 }
  0xc7   : > { %v400_v16 = vmul.f32 %v399_v15, %v399_v15 }
  0xc9   : > { %v401_v17 = vsel %vm393_vm0, %v400_v16, 0.0 }
  0xca   : > { %402 = vadd.xlane.f32.xlu0 %v401_v17 }
 0x153   : > { %v403_v18 = vpop.xlane.xlu0 %402 }
 0x154   : > { %v404_v19 = vmul.f32 0.03125, %v403_v18 }
 0x156   : > { %v405_v20 = vadd.f32 1e-12, %v404_v19 }
 0x158   : > { %1495 = vrsqrt.f32 %v405_v20 }
 0x165   : > { %v1496_v21 = vpop.eup %1495 }
 0x166   : > { %v407_v23 = vmul.f32 %v1496_v21, %v399_v15  ;;  %429 = sbr.rel (%p1290_p9) target bundleno = 365 (0x16d), region = 64 }
 0x168   : > { %v415_v25 = vmul.f32 %v1288_v22, %v407_v23 }
 0x16a   : > { %v1789_v26 = vadd.f32 %v1289_v24, %v415_v25 }
 0x16c   : > { %430 = vst.msk [vmem:[%s1791_s27] sm:$0xff] %vm393_vm0, %v1789_v26 }
 0x16d PF: > { %p1291_p10 = scmp.eq.s32.totalorder %s1758_s14, 0 }
 0x16f   : > { %433 = sbr.rel (%p1291_p10) target bundleno = 1767 (0x6e7), region = 68 }
 0x174   : > { %v1799_v27 = vld [vmem:[%s1768_s11] sm:$0xff]  ;;  %v1804_v28 = vld [vmem:[%s1974_s6 + $0x8] sm:$0x3]  ;;  %vm453_vm1 = vcmask 1041408   ;;  %v1623_v29 = vmov 0   ;;  %v1624_v30 = vmov 0.0  }
 0x175   : > { %1497 = vset.pattern.permute.xlu0 %v1623_v29  ;;  %1354 = vmatprep.subr.mxu0 %v1624_v30  ;;  %v1811_v31 = vld [vmem:[%s1974_s6] sm:$0xff]  ;;  %vm1625_vm2 = vmmov 0   ;;  %v1626_v32 = vmov 1   ;;  %v1826_v33 = vand.u32 127, %v386_v0  ;;  %vm449_vm3 = vcmask 80896   ;;  %v1841_v36 = vld [vmem:[%s1975_s7 + $0x8] sm:$0xff]  }
 0x176   : > { %444 = vperm.xlu0 %1497, %v1799_v27   ;;  %1355 = vmatpush3.msk.msra.mxu0 %vm453_vm1, %v1804_v28  ;;  %v1849_v39 = vld [vmem:[%s1975_s7] sm:$0xff]   ;;  %v1627_v40 = vmov 2   ;;  %v1628_v49 = vmov 3   ;;  %v1629_v61 = vmov 4   ;;  %v1630_v9 = vmov 5  }
 0x177   : > { %1356 = vmatprep.subr.mxu0 %v1624_v30  ;;  %1358 = vmatprep.mubr.msk.f32.mxu0 %vm1625_vm2, %v1624_v30  ;;  %v1160_v21 = vld [vmem:[%s1773_s2] sm:$0xff] }
 0x178   : > { %1357 = vmatpush3.msra.mxu0 %v1811_v31  ;;  %1361 = vmatprep.subr.bf16.mxu1 %v1624_v30 }
 0x179   : > { %1369 = vmatprep.subr.mxu0 %v1624_v30  ;;  %1365 = vmatprep.mubr.msk.bf16.mxu1 %vm1625_vm2, %v1624_v30 }
 0x17a   : > { %1498 = vset.pattern.permute.xlu0 %v1626_v32  ;;  %1362 = vmatpush3.bf16.msra.mxu1 %v1841_v36 }
 0x17b   : > { %529 = vperm.xlu0 %1498, %v1799_v27   ;;  %1363 = vmatprep.subr.bf16.mxu1 %v1624_v30 }
 0x17c   : > { %1499 = vset.pattern.permute.xlu1 %v1627_v40 }
 0x17d   : > { %665 = vperm.xlu1 %1499, %v1799_v27  }
 0x17e   : > { %1364 = vmatpush3.bf16.msra.mxu1 %v1849_v39 }
 0x17f   : > { %1384 = vmatprep.subr.mxu1 %v1624_v30  ;;  %1502 = vset.pattern.permute.xlu0 %v1630_v9 }
 0x180   : > { %1037 = vperm.xlu0 %1502, %v1799_v27  }
 0x181   : > { %1500 = vset.pattern.permute.xlu1 %v1628_v49 }
 0x182   : > { %789 = vperm.xlu1 %1500, %v1799_v27  }
 0x184   : > { %1504 = vset.pattern.permute.xlu0 %v1623_v29 }
 0x186   : > { %1501 = vset.pattern.permute.xlu1 %v1629_v61 }
 0x187   : > { %913 = vperm.xlu1 %1501, %v1799_v27  }
 0x18b   : > { %1503 = vset.pattern.permute.xlu1 %v1623_v29 }
 0x18c   : > { %1163 = vperm.xlu1 %1503, %v1160_v21  }
 0x1f1   : > { %v445_v34 = vpop.permute.xlu0 %444 }
 0x1f2   : > { %vm446_vm4 = vcmp.eq.s32.totalorder %v445_v34, %v1826_v33 }
 0x1f3   : > { %v1292_v35 = vsel %vm446_vm4, 1.0, %v1624_v30 }
 0x1f4   : > { %1359 = vmatmul.mubr.msk.f32.vlgmr.msra.gmra.mxu0 %vm449_vm3, %v1292_v35 }
 0x1f5   : > { %1370 = vmatpush3.msk.msra.mxu0 %vm453_vm1, %v1804_v28  ;;  %1373 = vmatprep.mubr.msk.f32.mxu0 %vm1625_vm2, %v1624_v30 }
 0x1f6   : > { %1371 = vmatprep.subr.mxu0 %v1624_v30  ;;  %v530_v37 = vpop.permute.xlu0 %529 }
 0x1f7   : > { %1372 = vmatpush3.msra.mxu0 %v1811_v31  ;;  %vm531_vm5 = vcmp.eq.s32.totalorder %v530_v37, %v1826_v33 }
 0x1f8   : > { %1376 = vmatprep.subr.bf16.mxu0 %v1624_v30  ;;  %v1295_v38 = vsel %vm531_vm5, 1.0, %v1624_v30  ;;  %v666_v47 = vpop.permute.xlu1 %665 }
 0x1f9   : > { %1374 = vmatmul.mubr.msk.f32.vlgmr.msra.gmra.mxu0 %vm449_vm3, %v1295_v38  ;;  %vm667_vm6 = vcmp.eq.s32.totalorder %v666_v47, %v1826_v33 }
 0x1fa   : > { %1377 = vmatpush3.bf16.msra.mxu0 %v1841_v36  ;;  %1380 = vmatprep.mubr.msk.bf16.mxu0 %vm1625_vm2, %v1624_v30  ;;  %v1301_v48 = vsel %vm667_vm6, 1.0, %v1624_v30 }
 0x1fb   : > { %1378 = vmatprep.subr.bf16.mxu0 %v1624_v30  ;;  %v1038_v19 = vpop.permute.xlu0 %1037 }
 0x1fc   : > { %vm1039_vm9 = vcmp.eq.s32.totalorder %v1038_v19, %v1826_v33 }
 0x1fd   : > { %v790_v59 = vpop.permute.xlu1 %789  ;;  %v1313_v20 = vsel %vm1039_vm9, 1.0, %v1624_v30 }
 0x1fe   : > { %1379 = vmatpush3.bf16.msra.mxu0 %v1849_v39  ;;  %vm791_vm7 = vcmp.eq.s32.totalorder %v790_v59, %v1826_v33 }
 0x1ff   : > { %1391 = vmatprep.subr.bf16.mxu0 %v1624_v30  ;;  %v1305_v60 = vsel %vm791_vm7, 1.0, %v1624_v30 }
 0x202   : > { %v914_v7 = vpop.permute.xlu1 %913 }
 0x203   : > { %vm915_vm8 = vcmp.eq.s32.totalorder %v914_v7, %v1826_v33 }
 0x204   : > { %v1309_v8 = vsel %vm915_vm8, 1.0, %v1624_v30 }
 0x207   : > { %v1164_v37 = vpop.permute.xlu1 %1163 }
 0x2b4   : > { %v523_v41 = vpop.f32.mrf.mxu0 }
 0x2b5   : > { %1507 = vtanh.f32 %v523_v41 }
 0x2b6   : > { %v1360_v42 = vpop.f32.mrf.mxu0 }
 0x2b9   : > { %v659_v45 = vpop.f32.mrf.mxu0 }
 0x2bb   : > { %v1375_v46 = vpop.f32.mrf.mxu0 }
 0x2c2   : > { %v1508_v43 = vpop.eup %1507 }
 0x2c3   : > { %v534_v44 = vpack.c.bf16 %v1508_v43, %v1508_v43 }
 0x2c5   : > { %1366 = vmatmul.mubr.msk.bf16.vlgmr.msra.gmra.mxu1 %vm393_vm0, %v534_v44 }
 0x2c6   : > { %1385 = vmatpush3.msk.msra.mxu1 %vm453_vm1, %v1804_v28  ;;  %1388 = vmatprep.mubr.msk.f32.mxu1 %vm1625_vm2, %v1624_v30 }
 0x2c7   : > { %1386 = vmatprep.subr.mxu1 %v1624_v30 }
 0x2c8   : > { %1387 = vmatpush3.msra.mxu1 %v1811_v31 }
 0x2c9   : > { %1399 = vmatprep.subr.mxu1 %v1624_v30 }
 0x2cd   : > { %1389 = vmatmul.mubr.msk.f32.vlgmr.msra.gmra.mxu1 %vm449_vm3, %v1301_v48 }
 0x2ce   : > { %1400 = vmatpush3.msk.msra.mxu1 %vm453_vm1, %v1804_v28  ;;  %1403 = vmatprep.mubr.msk.f32.mxu1 %vm1625_vm2, %v1624_v30 }
 0x2cf   : > { %1401 = vmatprep.subr.mxu1 %v1624_v30 }
 0x2d0   : > { %1402 = vmatpush3.msra.mxu1 %v1811_v31 }
 0x2d1   : > { %1406 = vmatprep.subr.bf16.mxu1 %v1624_v30  ;;  %1404 = vmatmul.mubr.msk.f32.vlgmr.msra.gmra.mxu1 %vm449_vm3, %v1305_v60 }
 0x2d2   : > { %1407 = vmatpush3.bf16.msra.mxu1 %v1841_v36  ;;  %1410 = vmatprep.mubr.msk.bf16.mxu1 %vm1625_vm2, %v1624_v30 }
 0x2d3   : > { %1408 = vmatprep.subr.bf16.mxu1 %v1624_v30 }
 0x2d6   : > { %1409 = vmatpush3.bf16.msra.mxu1 %v1849_v39 }
 0x2d7   : > { %1421 = vmatprep.subr.bf16.mxu1 %v1624_v30 }
 0x385   : > { %v584_v50 = vpop.f32.mrf.mxu1 }
 0x386   : > { %v660_v51 = vadd.f32 %v659_v45, %v584_v50 }
 0x387   : > { %v1367_v52 = vpop.f32.mrf.mxu1 }
 0x388   : > { %1509 = vtanh.f32 %v660_v51 }
 0x389   : > { %v587_v53 = vpop.f32.mrf.mxu1 }
 0x38b   : > { %v1368_v54 = vpop.f32.mrf.mxu1 }
 0x38d   : > { %v783_v57 = vpop.f32.mrf.mxu1 }
 0x38f   : > { %v1390_v58 = vpop.f32.mrf.mxu1 }
 0x391   : > { %v907_v5 = vpop.f32.mrf.mxu1 }
 0x393   : > { %v1405_v6 = vpop.f32.mrf.mxu1 }
 0x395   : > { %v1510_v55 = vpop.eup %1509 }
 0x396   : > { %v670_v56 = vpack.c.bf16 %v1510_v55, %v1510_v55 }
 0x398   : > { %1381 = vmatmul.mubr.msk.bf16.vlgmr.msra.gmra.mxu0 %vm393_vm0, %v670_v56 }
 0x399   : > { %1392 = vmatpush3.bf16.msra.mxu0 %v1841_v36  ;;  %1395 = vmatprep.mubr.msk.bf16.mxu0 %vm1625_vm2, %v1624_v30 }
 0x39a   : > { %1393 = vmatprep.subr.bf16.mxu0 %v1624_v30 }
 0x39d   : > { %1394 = vmatpush3.bf16.msra.mxu0 %v1849_v39 }
 0x39e   : > { %1414 = vmatprep.subr.mxu0 %v1624_v30 }
 0x458   : > { %v708_v62 = vpop.f32.mrf.mxu0 }
 0x459   : > { %v784_v63 = vadd.f32 %v783_v57, %v708_v62 }
 0x45a   : > { %v1382_v0 = vpop.f32.mrf.mxu0 }
 0x45b   : > { %1511 = vtanh.f32 %v784_v63 }
 0x45c   : > { %v711_v1 = vpop.f32.mrf.mxu0 }
 0x45e   : > { %v1383_v2 = vpop.f32.mrf.mxu0 }
 0x468   : > { %v1512_v3 = vpop.eup %1511 }
 0x469   : > { %v794_v4 = vpack.c.bf16 %v1512_v3, %v1512_v3 }
 0x46b   : > { %1396 = vmatmul.mubr.msk.bf16.vlgmr.msra.gmra.mxu0 %vm393_vm0, %v794_v4 }
 0x46c   : > { %1415 = vmatpush3.msk.msra.mxu0 %vm453_vm1, %v1804_v28  ;;  %1418 = vmatprep.mubr.msk.f32.mxu0 %vm1625_vm2, %v1624_v30 }
 0x46d   : > { %1416 = vmatprep.subr.mxu0 %v1624_v30 }
 0x46e   : > { %1417 = vmatpush3.msra.mxu0 %v1811_v31 }
 0x46f   : > { %1429 = vmatprep.subr.mxu0 %v1624_v30 }
 0x473   : > { %1419 = vmatmul.mubr.msk.f32.vlgmr.msra.gmra.mxu0 %vm449_vm3, %v1309_v8 }
 0x474   : > { %1430 = vmatpush3.msk.msra.mxu0 %vm453_vm1, %v1804_v28  ;;  %1433 = vmatprep.mubr.msk.f32.mxu0 %vm1625_vm2, %v1624_v30 }
 0x475   : > { %1431 = vmatprep.subr.mxu0 %v1624_v30 }
 0x476   : > { %1432 = vmatpush3.msra.mxu0 %v1811_v31 }
 0x477   : > { %1434 = vmatmul.mubr.msk.f32.vlgmr.msra.gmra.mxu0 %vm449_vm3, %v1313_v20 }
 0x52b   : > { %v832_v10 = vpop.f32.mrf.mxu0 }
 0x52c   : > { %v908_v11 = vadd.f32 %v907_v5, %v832_v10 }
 0x52d   : > { %v1397_v12 = vpop.f32.mrf.mxu0 }
 0x52e   : > { %1513 = vtanh.f32 %v908_v11 }
 0x52f   : > { %v835_v13 = vpop.f32.mrf.mxu0 }
 0x531   : > { %v1398_v14 = vpop.f32.mrf.mxu0 }
 0x533   : > { %v1031_v17 = vpop.f32.mrf.mxu0 }
 0x535   : > { %v1420_v18 = vpop.f32.mrf.mxu0 }
 0x537   : > { %v1155_v31 = vpop.f32.mrf.mxu0 }
 0x539   : > { %v1435_v32 = vpop.f32.mrf.mxu0 }
 0x53b   : > { %v1514_v15 = vpop.eup %1513 }
 0x53c   : > { %v918_v16 = vpack.c.bf16 %v1514_v15, %v1514_v15 }
 0x53e   : > { %1411 = vmatmul.mubr.msk.bf16.vlgmr.msra.gmra.mxu1 %vm393_vm0, %v918_v16 }
 0x53f   : > { %1422 = vmatpush3.bf16.msra.mxu1 %v1841_v36  ;;  %1425 = vmatprep.mubr.msk.bf16.mxu1 %vm1625_vm2, %v1624_v30 }
 0x540   : > { %1423 = vmatprep.subr.bf16.mxu1 %v1624_v30 }
 0x543   : > { %1424 = vmatpush3.bf16.msra.mxu1 %v1849_v39 }
 0x5fe   : > { %v956_v22 = vpop.f32.mrf.mxu1 }
 0x5ff   : > { %v1032_v23 = vadd.f32 %v1031_v17, %v956_v22 }
 0x600   : > { %v1412_v24 = vpop.f32.mrf.mxu1 }
 0x601   : > { %1515 = vtanh.f32 %v1032_v23 }
 0x602   : > { %v959_v25 = vpop.f32.mrf.mxu1 }
 0x604   : > { %v1413_v27 = vpop.f32.mrf.mxu1 }
 0x60e   : > { %v1516_v28 = vpop.eup %1515 }
 0x60f   : > { %v1042_v29 = vpack.c.bf16 %v1516_v28, %v1516_v28 }
 0x611   : > { %1426 = vmatmul.mubr.msk.bf16.vlgmr.msra.gmra.mxu1 %vm393_vm0, %v1042_v29 }
 0x6d1   : > { %v1080_v33 = vpop.f32.mrf.mxu1 }
 0x6d2   : > { %v1156_v34 = vadd.f32 %v1155_v31, %v1080_v33 }
 0x6d3   : > { %v1427_v30 = vpop.f32.mrf.mxu1 }
 0x6d4   : > { %1517 = vtanh.f32 %v1156_v34 }
 0x6d5   : > { %v1083_v35 = vpop.f32.mrf.mxu1 }
 0x6d7   : > { %v1428_v36 = vpop.f32.mrf.mxu1 }
 0x6e1   : > { %v1518_v38 = vpop.eup %1517 }
 0x6e2   : > { %v1166_v39 = vmul.f32 %v1518_v38, %v1164_v37 }
 0x6e4   : > { %v1167_v40 = vadd.f32 %v1166_v39, %v1789_v26 }
 0x6e6   : > { %1168 = vst.msk [vmem:[%s1791_s27] sm:$0xff] %vm393_vm0, %v1167_v40 }
 0x6e7 PF: > { %s1318_s2 = sshll.u32 %s1711_s0, 7  ;;  %s1183_s23 = sshll.u32 %s1791_s27, 4  ;;  %s1184_s23 = int_to_ptr.vmem [resolvable:$true] %s1183_s23 }
 0x6e8   : > { %s1181_s22 = scalar_lea.hbm %s1978_s10, %s1318_s2  ;;  %s1170_s28 = scalar_lea.sflag [#allocation6], %s365_s18 }
 0x6e9   : > { %s1553_s29 = scalar_lea.vmem %s1184_s23, 128  ;;  %s1631_s30 = smov [#allocation7]  }
 0x6ea   : > { %p1554_p12 = scmp.ne.s32.totalorder %s1184_s23, %s1553_s29  ;;  %s1557_s12 = sshll.u32 %s1631_s30, 4  ;;  %s1558_s12 = int_to_ptr.vmem [resolvable:$false] %s1557_s12 }
 0x6eb   : > { %s1559_s14 = scalar_lea.vmem %s1558_s12, 256  ;;  %p1560_p1 = scmp.lt.s32.totalorder %s1184_s23, %s1558_s12 }
 0x6ec   : > { %p1555_p13 = pnand %p1554_p12, %p1728_p5  ;;  %p1561_p2 = scmp.lt.s32.totalorder %s1559_s14, %s1553_s29 }
 0x6ee   : > { %p1556_p0 = pneg %p1555_p13  ;;  %p1562_p3 = por %p1561_p2, %p1560_p1 }
 0x6f0   : > { %p1563_p4 = pnand %p1562_p3, %p1556_p0 }
 0x6f2   : > { %1566 = shalt.err (!%p1563_p4)
}
 0x6f3   : > { %s1567_s0 = scalar_lea.hbm %s1181_s22, 128  ;;  %s1571_s11 = scalar_lea.hbm %s1978_s10, 256 }
 0x6f4   : > { %p1568_p7 = scmp.ne.s32.totalorder %s1181_s22, %s1567_s0  ;;  %p1572_p9 = scmp.lt.s32.totalorder %s1181_s22, %s1978_s10 }
 0x6f5   : > { %p1573_p10 = scmp.lt.s32.totalorder %s1571_s11, %s1567_s0 }
 0x6f6   : > { %p1569_p8 = pnand %p1568_p7, %p1728_p5 }
 0x6f7   : > { %p1574_p12 = por %p1573_p10, %p1572_p9 }
 0x6f8   : > { %p1570_p11 = pneg %p1569_p8 }
 0x6fa   : > { %p1575_p13 = pnand %p1574_p12, %p1570_p11 }
 0x6fc   : > { %1578 = shalt.err (!%p1575_p13)
}
 0x6fd   : > { %1440 = dma.vmem_to_hbm [thread:$0]  (%p1728_p5), %s1184_s23, 128, %s1181_s22, %s1170_s28  }
 0x6fe PF: > { %p1452_p0 = scmp.ge.s32.totalorder %s1619_s19, 2  ;;  %s1195_s2 = sand.u32 1, %s1607_s16  }
 0x6ff   : > { %s1196_s15 = scalar_lea.sflag [#allocation6], %s1195_s2 }
 0x700   : > { %p1447_p1 = pnand %p1452_p0, %p1732_p6 }
 0x702   : > { %p1448_p2 = pneg %p1447_p1 }
 0x704   : > { %1602 = dma.done.wait (%p1448_p2), %s1196_s15, 128  }
 0x705   : > { %1604 = vsyncadd (%p1448_p2), %s1196_s15, 4294967168  ;;  %s1987_s20 = sld [smem:[#allocation11_spill]]  ;;  %p25_p3 = scmp.ge.s32.totalorder %s1715_s21, 4  }
 0x706   : > { %s1988_s18 = sld [smem:[#allocation12_spill]]  ;;  %s1989_s16 = smov %s1611_s17 }
 0x707   : > { %s1991_s19 = smov %s1715_s21  ;;  %27 = sbr.rel (!%p25_p3) target bundleno = 10 (0xa), region = 110 }
 0x70b   : > { %s1990_s17 = smov %s1987_s20 }
 0x70c   :  { %1201 = vsyncpa [#allocation5], 1 }
 0x70d   :  { %1203 = vsyncpa [#allocation5 + $0x1], 1 }
 0x70e   :  { %1204 = vsyncpa [#allocation6], 1 }
 0x70f   :  { %1206 = vsyncpa [#allocation6 + $0x1], 1 }

</bundles_post_ra>
